<compile_context>
chip_gen: v6e
topology: v6e:2x2x1
jax: 0.10.0
libtpu: 0.0.40
codegen_flags: <defaults>
</compile_context>

<pallas_src>
import jax
import jax.numpy as jnp
from jax.experimental import pallas as pl
from jax.experimental.pallas import tpu as pltpu

EPS = 1e-5
LANES = 128


def _round_up(n, m):
    return ((n + m - 1) // m) * m


# ----------------------------------------------------------------------------
# Kernels
# ----------------------------------------------------------------------------
def _boat_id_train_kernel(x_ref, gamma_ref, beta_ref, wt_ref, bias_ref,
                          o_ref, xn_ref):
    """One C tile of: out = BatchNorm1d(x) @ W.T + b  (training-mode stats).

    x_ref:     (B, D)   full batch (needed for batch statistics), grid-invariant
    gamma_ref: (1, D)   BN weight
    beta_ref:  (1, D)   BN bias
    wt_ref:    (D, TC)  pre-transposed, zero-padded, bf16 Linear weight tile
    bias_ref:  (1, TC)  Linear bias tile
    o_ref:     (B, TC)  logits tile
    xn_ref:    (B, D)   bf16 scratch with normalized activations, written once
                        (first tile) and reused by every later C tile.
    """
    @pl.when(pl.program_id(0) == 0)
    def _():
        x = x_ref[...].astype(jnp.float32)
        inv_b = jnp.float32(1.0 / x.shape[0])
        mean = jnp.sum(x, axis=0, keepdims=True) * inv_b            # (1, D)
        xc = x - mean
        # Two-pass (centered) biased variance: matches PyTorch and avoids the
        # E[x^2] - E[x]^2 cancellation. Runs once per call, not per C tile.
        var = jnp.sum(xc * xc, axis=0, keepdims=True) * inv_b       # (1, D)
        scale = jax.lax.rsqrt(var + EPS) * gamma_ref[...]           # (1, D)
        xn_ref[...] = (xc * scale + beta_ref[...]).astype(xn_ref.dtype)

    # Per-tile work: bf16 x bf16 MXU matmul with f32 accumulation + bias add.
    out = jnp.dot(xn_ref[...], wt_ref[...], preferred_element_type=jnp.float32)
    o_ref[...] = (out + bias_ref[...]).astype(o_ref.dtype)


def _boat_id_eval_kernel(x_ref, wt_ref, bias_ref, o_ref):
    """Eval mode: BN (running stats) already folded into W/b -> matmul + bias."""
    out = jnp.dot(x_ref[...].astype(jnp.bfloat16), wt_ref[...],
                  preferred_element_type=jnp.float32)
    o_ref[...] = (out + bias_ref[...]).astype(o_ref.dtype)


# ----------------------------------------------------------------------------
# One-time parameter prep (model load, not per call)
# ----------------------------------------------------------------------------
def prepare_params(gamma, beta, weight, bias):
    """Training-mode prep: transpose + pad C to a lane multiple + bf16-cast the
    Linear weight; reshape the BN affine to (1, D)."""
    C, D = weight.shape
    c_pad = _round_up(C, LANES)
    wt = jnp.zeros((D, c_pad), jnp.bfloat16).at[:, :C].set(
        weight.T.astype(jnp.bfloat16))
    bias2 = jnp.zeros((1, c_pad), jnp.float32).at[:, :C].set(
        bias.astype(jnp.float32))
    gamma2 = gamma.reshape(1, D).astype(jnp.float32)
    beta2 = beta.reshape(1, D).astype(jnp.float32)
    return (gamma2, beta2, wt, bias2, C)


def prepare_params_eval(gamma, beta, running_mean, running_var, weight, bias):
    """Eval-mode prep: fold running stats + BN affine into the Linear offline.

    xn = x * s + t  with  s = gamma / sqrt(rv + eps),  t = beta - rm * s
    out = xn @ W.T + b = x @ (W * s).T + (b + W @ t)
    """
    C, D = weight.shape
    c_pad = _round_up(C, LANES)
    s = gamma / jnp.sqrt(running_var + EPS)                 # (D,)
    t = beta - running_mean * s                             # (D,)
    w_fold = (weight * s[None, :]).astype(jnp.float32)      # (C, D)
    b_fold = (bias + weight @ t).astype(jnp.float32)        # (C,)
    wt = jnp.zeros((D, c_pad), jnp.bfloat16).at[:, :C].set(
        w_fold.T.astype(jnp.bfloat16))
    bias2 = jnp.zeros((1, c_pad), jnp.float32).at[:, :C].set(b_fold)
    return (wt, bias2, C)


# ----------------------------------------------------------------------------
# Wrappers
# ----------------------------------------------------------------------------
def _pick_tile_c(c_pad, tile_c):
    if tile_c is None:
        # 256 matches the v6e/v7x MXU and stays well inside v7x's 64 MiB VMEM.
        # For large C on v5e/v6e, pass tile_c=512 to halve the grid-step count.
        tile_c = 256 if c_pad % 256 == 0 else 128
    tile_c = min(tile_c, c_pad)
    tile_c = max(LANES, (tile_c // LANES) * LANES)
    while c_pad % tile_c:
        tile_c -= LANES
    return tile_c


def _vmem_limit_bytes(B, D, tile_c):
    # Resident x block + xn scratch + double-buffered tiled operands, 2x headroom.
    est = (B * D * 4                # x (grid-invariant, resident)
           + B * D * 2              # xn scratch (bf16)
           + 2 * D * 4              # gamma, beta
           + 2 * (D * tile_c * 2)   # W.T tile (bf16), double-buffered
           + 2 * (tile_c * 4)       # bias tile
           + 2 * (B * tile_c * 4))  # output tile
    return int(min(max(2 * est, 8 << 20), 64 << 20))


def boat_id_classifier(features, prepared, *, tile_c=None, return_padded=False):
    """Training-mode forward (batch statistics), matching the PyTorch module.

    features: (B, D) float; prepared: output of prepare_params().
    Returns (B, C) f32 logits, or the zero-padded (B, c_pad) slab if
    return_padded=True (skips an output slice copy).
    """
    gamma2, beta2, wt, bias2, C = prepared
    B, D = features.shape
    c_pad = wt.shape[1]
    tile_c = _pick_tile_c(c_pad, tile_c)
    grid = (c_pad // tile_c,)

    out = pl.pallas_call(
        _boat_id_train_kernel,
        out_shape=jax.ShapeDtypeStruct((B, c_pad), jnp.float32),
        grid_spec=pltpu.PrefetchScalarGridSpec(
            num_scalar_prefetch=0,
            grid=grid,
            in_specs=[
                pl.BlockSpec((B, D), lambda j: (0, 0)),        # x (full batch)
                pl.BlockSpec((1, D), lambda j: (0, 0)),        # gamma
                pl.BlockSpec((1, D), lambda j: (0, 0)),        # beta
                pl.BlockSpec((D, tile_c), lambda j: (0, j)),   # W.T tile (bf16)
                pl.BlockSpec((1, tile_c), lambda j: (0, j)),   # bias tile
            ],
            out_specs=pl.BlockSpec((B, tile_c), lambda j: (0, j)),
            scratch_shapes=[pltpu.VMEM((B, D), jnp.bfloat16)],  # xn, written once
        ),
        compiler_params=pltpu.CompilerParams(
            # "arbitrary": the xn scratch is written only on the first visited
            # tile (pl.when guard), so C tiles are NOT core-independent.
            dimension_semantics=("arbitrary",),
            vmem_limit_bytes=_vmem_limit_bytes(B, D, tile_c),
        ),
    )(features, gamma2, beta2, wt, bias2)
    return out if return_padded else out[:, :C]


def boat_id_classifier_eval(features, prepared_eval, *, tile_c=None,
                            return_padded=False):
    """Eval-mode forward: BN folded into the Linear -> pure matmul + bias."""
    wt, bias2, C = prepared_eval
    B, D = features.shape
    c_pad = wt.shape[1]
    tile_c = _pick_tile_c(c_pad, tile_c)
    grid = (c_pad // tile_c,)

    out = pl.pallas_call(
        _boat_id_eval_kernel,
        out_shape=jax.ShapeDtypeStruct((B, c_pad), jnp.float32),
        grid_spec=pltpu.PrefetchScalarGridSpec(
            num_scalar_prefetch=0,
            grid=grid,
            in_specs=[
                pl.BlockSpec((B, D), lambda j: (0, 0)),
                pl.BlockSpec((D, tile_c), lambda j: (0, j)),
                pl.BlockSpec((1, tile_c), lambda j: (0, j)),
            ],
            out_specs=pl.BlockSpec((B, tile_c), lambda j: (0, j)),
        ),
        compiler_params=pltpu.CompilerParams(
            dimension_semantics=("parallel",),  # tiles fully independent here
            vmem_limit_bytes=_vmem_limit_bytes(B, D, tile_c),
        ),
    )(features, wt, bias2)
    return out if return_padded else out[:, :C]


# ----------------------------------------------------------------------------
# Pure-JAX references + self-test
# ----------------------------------------------------------------------------
def _reference_train(features, gamma, beta, weight, bias):
    x = features.astype(jnp.float32)
    mean = jnp.mean(x, axis=0, keepdims=True)
    var = jnp.mean((x - mean) ** 2, axis=0, keepdims=True)
    xn = (x - mean) / jnp.sqrt(var + EPS) * gamma + beta
    return xn @ weight.T + bias


def _reference_eval(features, gamma, beta, rm, rv, weight, bias):
    x = features.astype(jnp.float32)
    xn = (x - rm) / jnp.sqrt(rv + EPS) * gamma + beta
    return xn @ weight.T + bias


if __name__ == "__main__":
    # Small shapes consistent with the module (input_size -> D, classes -> C).
    B, D = 8, 256
    key = jax.random.PRNGKey(0)
    k_x, k_g, k_be, k_rm, k_rv = jax.random.split(key, 5)

    features = jax.random.normal(k_x, (B, D), dtype=jnp.float32)
    gamma = 1.0 + 0.1 * jax.random.normal(k_g, (D,), dtype=jnp.float32)
    beta = 0.1 * jax.random.normal(k_be, (D,), dtype=jnp.float32)
    bound = 1.0 / (D ** 0.5)

    def make_linear(C):
        kw, kb = jax.random.split(jax.random.fold_in(key, C))
        w = jax.random.uniform(kw, (C, D), minval=-bound, maxval=bound,
                               dtype=jnp.float32)
        b = jax.random.uniform(kb, (C,), minval=-bound, maxval=bound,
                               dtype=jnp.float32)
        return w, b

    # Training-mode path. C=100 -> single 128-wide tile (lane-dense padded
    # output). C=300 -> c_pad=384, 3 C tiles, exercising the write-once xn
    # scratch reused across tiles.
    for C in (100, 300):
        weight, bias = make_linear(C)
        prepared = prepare_params(gamma, beta, weight, bias)  # once at load
        out = jax.block_until_ready(boat_id_classifier(features, prepared))
        ref = _reference_train(features, gamma, beta, weight, bias)
        assert out.shape == (B, C)
        # bf16 matmul operands (f32 accumulation) -> slightly looser tolerance.
        assert jnp.allclose(out, ref, atol=2e-2, rtol=2e-2), (
            C, float(jnp.max(jnp.abs(out - ref))))

    # Eval-mode path (running stats folded into the Linear offline).
    C = 100
    weight, bias = make_linear(C)
    running_mean = 0.05 * jax.random.normal(k_rm, (D,), dtype=jnp.float32)
    running_var = 1.0 + 0.1 * jax.random.uniform(k_rv, (D,), dtype=jnp.float32)
    prepared_eval = prepare_params_eval(gamma, beta, running_mean, running_var,
                                        weight, bias)
    out_e = jax.block_until_ready(
        boat_id_classifier_eval(features, prepared_eval))
    ref_e = _reference_eval(features, gamma, beta, running_mean, running_var,
                            weight, bias)
    assert out_e.shape == (B, C)
    assert jnp.allclose(out_e, ref_e, atol=2e-2, rtol=2e-2), (
        float(jnp.max(jnp.abs(out_e - ref_e))))

    print("KERNEL_OK")
</pallas_src>

<mosaic_0001>
module attributes {stable_mosaic.version = 11 : i64} {
  func.func @_boat_id_train_kernel(%arg0: i32, %arg1: memref<8x256xf32, #tpu.memory_space<vmem>>, %arg2: memref<1x256xf32, #tpu.memory_space<vmem>>, %arg3: memref<1x256xf32, #tpu.memory_space<vmem>>, %arg4: memref<256x128xbf16, #tpu.memory_space<vmem>>, %arg5: memref<1x128xf32, #tpu.memory_space<vmem>>, %arg6: memref<8x128xf32, #tpu.memory_space<vmem>>, %arg7: memref<8x256xbf16, #tpu.memory_space<vmem>>) attributes {dimension_semantics = [#tpu.dimension_semantics<arbitrary>], iteration_bounds = array<i64: 1>, scalar_prefetch = 0 : i64, scratch_operands = 1 : i64, tpu.core_type = #tpu.core_type<tc>, window_params = [{pipeline_mode = #tpu.pipeline_mode<synchronous>, transform_indices = @transform_0, window_bounds = array<i64: 8, 256>}, {pipeline_mode = #tpu.pipeline_mode<synchronous>, transform_indices = @transform_1, window_bounds = array<i64: 1, 256>}, {pipeline_mode = #tpu.pipeline_mode<synchronous>, transform_indices = @transform_2, window_bounds = array<i64: 1, 256>}, {transform_indices = @transform_3, window_bounds = array<i64: 256, 128>}, {transform_indices = @transform_4, window_bounds = array<i64: 1, 128>}, {transform_indices = @transform_5, window_bounds = array<i64: 8, 128>}]} {
    %c0_i32 = arith.constant 0 : i32
    %0 = arith.cmpi eq, %arg0, %c0_i32 : i32
    %1 = arith.extui %0 : i1 to i32
    %c0_i32_0 = arith.constant 0 : i32
    %2 = arith.cmpi ne, %1, %c0_i32_0 : i32
    scf.if %2 {
      %c0_8 = arith.constant 0 : index
      %c0_9 = arith.constant 0 : index
      %10 = vector.load %arg1[%c0_8, %c0_9] : memref<8x256xf32, #tpu.memory_space<vmem>>, vector<8x256xf32>
      %cst_10 = arith.constant dense<0.000000e+00> : vector<256xf32>
      %11 = vector.multi_reduction <add>, %10, %cst_10 [0] : vector<8x256xf32> to vector<256xf32>
      %12 = vector.shape_cast %11 : vector<256xf32> to vector<1x256xf32>
      %cst_11 = arith.constant 1.250000e-01 : f32
      %13 = vector.broadcast %cst_11 : f32 to vector<1x256xf32>
      %14 = arith.mulf %12, %13 : vector<1x256xf32>
      %15 = vector.broadcast %14 : vector<1x256xf32> to vector<8x256xf32>
      %16 = arith.subf %10, %15 : vector<8x256xf32>
      %17 = arith.mulf %16, %16 : vector<8x256xf32>
      %cst_12 = arith.constant dense<0.000000e+00> : vector<256xf32>
      %18 = vector.multi_reduction <add>, %17, %cst_12 [0] : vector<8x256xf32> to vector<256xf32>
      %19 = vector.shape_cast %18 : vector<256xf32> to vector<1x256xf32>
      %cst_13 = arith.constant 1.250000e-01 : f32
      %20 = vector.broadcast %cst_13 : f32 to vector<1x256xf32>
      %21 = arith.mulf %19, %20 : vector<1x256xf32>
      %cst_14 = arith.constant 9.99999974E-6 : f32
      %22 = vector.broadcast %cst_14 : f32 to vector<1x256xf32>
      %23 = arith.addf %21, %22 : vector<1x256xf32>
      %24 = math.rsqrt %23 : vector<1x256xf32>
      %c0_15 = arith.constant 0 : index
      %c0_16 = arith.constant 0 : index
      %25 = vector.load %arg2[%c0_15, %c0_16] : memref<1x256xf32, #tpu.memory_space<vmem>>, vector<1x256xf32>
      %26 = arith.mulf %24, %25 : vector<1x256xf32>
      %27 = vector.broadcast %26 : vector<1x256xf32> to vector<8x256xf32>
      %28 = arith.mulf %16, %27 : vector<8x256xf32>
      %c0_17 = arith.constant 0 : index
      %c0_18 = arith.constant 0 : index
      %29 = vector.load %arg3[%c0_17, %c0_18] : memref<1x256xf32, #tpu.memory_space<vmem>>, vector<1x256xf32>
      %30 = vector.broadcast %29 : vector<1x256xf32> to vector<8x256xf32>
      %31 = arith.addf %28, %30 : vector<8x256xf32>
      %32 = arith.truncf %31 : vector<8x256xf32> to vector<8x256xbf16>
      %c0_19 = arith.constant 0 : index
      %c0_20 = arith.constant 0 : index
      %33 = vector.load %arg7[%c0_19, %c0_20] : memref<8x256xbf16, #tpu.memory_space<vmem>>, vector<8x256xbf16>
      tpu.vector_store %arg7[%c0_19, %c0_20], %32 {strides = array<i32>} : memref<8x256xbf16, #tpu.memory_space<vmem>>, vector<8x256xbf16>,
    } else {
    }
    %c0 = arith.constant 0 : index
    %c0_1 = arith.constant 0 : index
    %3 = vector.load %arg7[%c0, %c0_1] : memref<8x256xbf16, #tpu.memory_space<vmem>>, vector<8x256xbf16>
    %c0_2 = arith.constant 0 : index
    %c0_3 = arith.constant 0 : index
    %4 = vector.load %arg4[%c0_2, %c0_3] : memref<256x128xbf16, #tpu.memory_space<vmem>>, vector<256x128xbf16>
    %cst = arith.constant dense<0.000000e+00> : vector<8x128xf32>
    %5 = tpu.matmul %3, %4, %cst {dimension_numbers = #tpu.dot_dimension_numbers<[1], [0], [0], [1], [0, 0, 1, 1], [], []>} : vector<8x256xbf16>, vector<256x128xbf16>, vector<8x128xf32> -> vector<8x128xf32>
    %c0_4 = arith.constant 0 : index
    %c0_5 = arith.constant 0 : index
    %6 = vector.load %arg5[%c0_4, %c0_5] : memref<1x128xf32, #tpu.memory_space<vmem>>, vector<1x128xf32>
    %7 = vector.broadcast %6 : vector<1x128xf32> to vector<8x128xf32>
    %8 = arith.addf %5, %7 : vector<8x128xf32>
    %c0_6 = arith.constant 0 : index
    %c0_7 = arith.constant 0 : index
    %9 = vector.load %arg6[%c0_6, %c0_7] : memref<8x128xf32, #tpu.memory_space<vmem>>, vector<8x128xf32>
    tpu.vector_store %arg6[%c0_6, %c0_7], %8 {strides = array<i32>} : memref<8x128xf32, #tpu.memory_space<vmem>>, vector<8x128xf32>,
    return
  }
  func.func @transform_0(%arg0: i32) -> (i32, i32) {
    %c0_i32 = arith.constant 0 : i32
    %c0_i32_0 = arith.constant 0 : i32
    %c0_i32_1 = arith.constant 0 : i32
    return %c0_i32, %c0_i32_0 : i32, i32
  }
  func.func @transform_1(%arg0: i32) -> (i32, i32) {
    %c0_i32 = arith.constant 0 : i32
    %c0_i32_0 = arith.constant 0 : i32
    %c0_i32_1 = arith.constant 0 : i32
    return %c0_i32, %c0_i32_0 : i32, i32
  }
  func.func @transform_2(%arg0: i32) -> (i32, i32) {
    %c0_i32 = arith.constant 0 : i32
    %c0_i32_0 = arith.constant 0 : i32
    %c0_i32_1 = arith.constant 0 : i32
    return %c0_i32, %c0_i32_0 : i32, i32
  }
  func.func @transform_3(%arg0: i32) -> (i32, i32) {
    %c0_i32 = arith.constant 0 : i32
    %c0_i32_0 = arith.constant 0 : i32
    return %c0_i32, %arg0 : i32, i32
  }
  func.func @transform_4(%arg0: i32) -> (i32, i32) {
    %c0_i32 = arith.constant 0 : i32
    %c0_i32_0 = arith.constant 0 : i32
    return %c0_i32, %arg0 : i32, i32
  }
  func.func @transform_5(%arg0: i32) -> (i32, i32) {
    %c0_i32 = arith.constant 0 : i32
    %c0_i32_0 = arith.constant 0 : i32
    return %c0_i32, %arg0 : i32, i32
  }
}

</mosaic_0001>

<bundles_post_ra>
// kernel: tpu_custom_call.1
= control target key start
LH: loop header
LB: loop body
LE: loop exit
PB: predicated region body
PF: predicated region fallthrough
CT: control target
= control target key end

     0   :  { %10 = vsyncpa [#allocation4], 0  ;;  %s559_s0 = inlined_call_operand.hbm [shape: f32[8,256], index: 0, kind: input, shape index: {}]   ;;  %s560_s1 = inlined_call_operand.hbm [shape: f32[1,256], index: 1, kind: input, shape index: {}]   ;;  %s561_s2 = inlined_call_operand.vmem [shape: f32[1,256], index: 2, kind: input, shape index: {}]   ;;  %s562_s3 = inlined_call_operand.hbm [shape: bf16[256,128], index: 3, kind: input, shape index: {}]   ;;  %s563_s4 = inlined_call_operand.vmem [shape: f32[1,128], index: 4, kind: input, shape index: {}]   ;;  %s564_s5 = inlined_call_operand.hbm [shape: f32[8,128], index: 5, kind: output, shape index: {}]  }
   0x1   :  { %11 = vsyncpa [#allocation7], 0 }
   0x2   :  { %12 = vsyncpa [#allocation5], 0  ;;  %s505_s18 = smov [#allocation6]   ;;  %s506_s20 = smov [#allocation3]  }
   0x3   :  { %s29_s19 = sshll.u32 %s505_s18, 4  ;;  %s19_s21 = sshll.u32 %s506_s20, 4  ;;  %s30_s19 = int_to_ptr.vmem [resolvable:$true] %s29_s19  ;;  %s20_s21 = int_to_ptr.vmem [resolvable:$true] %s19_s21 }
   0x4   :  { %s427_s22 = scalar_lea.vmem %s30_s19, 32  ;;  %p432_p1 = scmp.lt.s32.totalorder %s30_s19, %s30_s19 }
   0x5   :  { %p428_p0 = scmp.ne.s32.totalorder %s30_s19, %s427_s22  ;;  %p433_p2 = scmp.lt.s32.totalorder %s427_s22, %s427_s22 }
   0x7   :  { %p434_p3 = por %p433_p2, %p432_p1 }
   0x9   :  { %p435_p4 = pnand %p434_p3, %p428_p0 }
   0xb   :  { %438 = shalt.err (!%p435_p4)
}
   0xc   :  { %32 = dma.hbm_to_vmem [thread:$0]  %s560_s1, 32, %s30_s19, [#allocation7]  }
   0xd   :  { %s447_s25 = scalar_lea.vmem %s20_s21, 256  ;;  %p452_p6 = scmp.lt.s32.totalorder %s20_s21, %s20_s21 }
   0xe   :  { %p448_p5 = scmp.ne.s32.totalorder %s20_s21, %s447_s25  ;;  %p453_p7 = scmp.lt.s32.totalorder %s447_s25, %s447_s25 }
  0x10   :  { %p454_p8 = por %p453_p7, %p452_p6 }
  0x12   :  { %p455_p9 = pnand %p454_p8, %p448_p5 }
  0x14   :  { %458 = shalt.err (!%p455_p9)
}
  0x15   :  { %22 = dma.hbm_to_vmem [thread:$0]  %s559_s0, 256, %s20_s21, [#allocation4]  }
  0x16   :  { %s507_s28 = smov [#allocation8]  }
  0x17   :  { %s40_s29 = sshll.u32 %s507_s28, 4  ;;  %s41_s29 = int_to_ptr.vmem [resolvable:$true] %s40_s29 }
  0x18   :  { %s467_s30 = scalar_lea.vmem %s41_s29, 2048  ;;  %p472_p11 = scmp.lt.s32.totalorder %s41_s29, %s41_s29 }
  0x19   :  { %p468_p10 = scmp.ne.s32.totalorder %s41_s29, %s467_s30  ;;  %p473_p12 = scmp.lt.s32.totalorder %s467_s30, %s467_s30 }
  0x1b   :  { %p474_p13 = por %p473_p12, %p472_p11 }
  0x1d   :  { %p475_p0 = pnand %p474_p13, %p468_p10 }
  0x1f   :  { %478 = shalt.err (!%p475_p0)
}
  0x20   :  { %s508_s1 = smov 64   ;;  %s509_s6 = smov 4  }
  0x21   :  { %46 = dma.hbm_to_vmem [thread:$0]  %s562_s3, 2048, %s41_s29, [#allocation7], %s508_s1, %s508_s1, %s509_s6  }
  0x22   :  { %499 = dma.done.wait [#allocation4], 256  }
  0x23   :  { %500 = vsyncadd [#allocation4], 4294967040 }
  0x24   :  { %501 = dma.done.wait [#allocation7], 2080  }
  0x25   :  { %502 = vsyncadd [#allocation7], 4294965216  ;;  %v399_v0 = vld [vmem:[#allocation8 + $0x78] sm:$0xff]   ;;  %v401_v2 = vld [vmem:[#allocation8 + $0x70] sm:$0xff]   ;;  %v103_v51 = vlaneseq }
  0x26   :  { %v400_v1 = vld [vmem:[#allocation8 + $0x38] sm:$0xff]   ;;  %371 = vmatprep.subr.bf16.mxu0 %v399_v0  ;;  %v402_v3 = vld [vmem:[#allocation8 + $0x30] sm:$0xff]   ;;  %v403_v4 = vld [vmem:[#allocation8 + $0x68] sm:$0xff]  }
  0x27   :  { %372 = vmatpush3.bf16.msra.mxu0 %v400_v1  ;;  %v404_v5 = vld [vmem:[#allocation8 + $0x28] sm:$0xff]   ;;  %v405_v6 = vld [vmem:[#allocation8 + $0x60] sm:$0xff]   ;;  %v407_v8 = vld [vmem:[#allocation8 + $0x58] sm:$0xff]   ;;  %v104_v53 = vshrl.u32 %v103_v51, 7 }
  0x28   :  { %373 = vmatprep.subr.bf16.mxu0 %v401_v2  ;;  %v406_v7 = vld [vmem:[#allocation8 + $0x20] sm:$0xff]   ;;  %v408_v9 = vld [vmem:[#allocation8 + $0x18] sm:$0xff]   ;;  %v409_v10 = vld [vmem:[#allocation8 + $0x50] sm:$0xff]  }
  0x29   :  { %v64_v11 = vld [vmem:[#allocation3 + $0x8] sm:$0xff]  ;;  %v63_v13 = vld [vmem:[#allocation3] sm:$0xff]  ;;  %v413_v23 = vld [vmem:[#allocation8 + $0x40] sm:$0xff]   ;;  %v109_v54 = vsub.s32 1, %v104_v53  ;;  %v105_v56 = vsub.s32 0, %v104_v53 }
  0x2a   :  { %v71_v12 = vrot.slane %v64_v11, 4  ;;  %v65_v14 = vrot.slane %v63_v13, 4  ;;  %v410_v15 = vld [vmem:[#allocation8 + $0x10] sm:$0xff]   ;;  %v411_v17 = vld [vmem:[#allocation8 + $0x48] sm:$0xff]   ;;  %v414_v27 = vld [vmem:[#allocation8] sm:$0xff]  }
  0x2b   :  { %374 = vmatpush3.bf16.msra.mxu0 %v402_v3  ;;  %v412_v21 = vld [vmem:[#allocation8 + $0x8] sm:$0xff]   ;;  %v101_v55 = vld [vmem:[#allocation6] sm:$0x3] }
  0x2c   :  { %375 = vmatprep.subr.bf16.mxu0 %v403_v4  ;;  %v72_v16 = vadd.f32 %v71_v12, %v64_v11  ;;  %v66_v18 = vadd.f32 %v65_v14, %v63_v13  ;;  %v110_v57 = vrot.slane %v101_v55, %v109_v54  ;;  %v106_v58 = vrot.slane %v101_v55, %v105_v56  ;;  %v125_v60 = vld [vmem:[%s561_s2] sm:$0x3]  ;;  %s510_s2 = smov [#allocation9]  }
  0x2d   :  { %v134_v1 = vrot.slane %v125_v60, %v109_v54  ;;  %v130_v2 = vrot.slane %v125_v60, %v105_v56  ;;  %s338_s11 = sshll.u32 %s510_s2, 4  ;;  %s339_s11 = int_to_ptr.vmem [resolvable:$true] %s338_s11 }
  0x2e   :  { %v73_v19 = vrot.slane %v72_v16, 2  ;;  %v67_v20 = vrot.slane %v66_v18, 2  ;;  %s479_s12 = scalar_lea.vmem %s339_s11, 128  ;;  %p484_p2 = scmp.lt.s32.totalorder %s339_s11, %s339_s11 }
  0x2f   :  { %376 = vmatpush3.bf16.msra.mxu0 %v404_v5  ;;  %p480_p1 = scmp.ne.s32.totalorder %s339_s11, %s479_s12  ;;  %p485_p3 = scmp.lt.s32.totalorder %s479_s12, %s479_s12 }
  0x30   :  { %377 = vmatprep.subr.bf16.mxu0 %v405_v6  ;;  %v74_v22 = vadd.f32 %v73_v19, %v72_v16  ;;  %v68_v24 = vadd.f32 %v67_v20, %v66_v18 }
  0x31   :  { %p486_p4 = por %p485_p3, %p484_p2 }
  0x32   :  { %v75_v25 = vrot.slane %v74_v22, 1  ;;  %v69_v26 = vrot.slane %v68_v24, 1 }
  0x33   :  { %378 = vmatpush3.bf16.msra.mxu0 %v406_v7  ;;  %p487_p5 = pnand %p486_p4, %p480_p1 }
  0x34   :  { %379 = vmatprep.subr.bf16.mxu0 %v407_v8  ;;  %v76_v28 = vadd.f32 %v75_v25, %v74_v22  ;;  %v70_v29 = vadd.f32 %v69_v26, %v68_v24 }
  0x36   :  { %v78_v30 = vmul.f32 0.125, %v76_v28  ;;  %v77_v31 = vmul.f32 0.125, %v70_v29 }
  0x37   :  { %380 = vmatpush3.bf16.msra.mxu0 %v408_v9 }
  0x38   :  { %381 = vmatprep.subr.bf16.mxu0 %v409_v10  ;;  %v80_v32 = vsub.f32 %v64_v11, %v78_v30  ;;  %v79_v33 = vsub.f32 %v63_v13, %v77_v31  ;;  %v349_v11 = vld [vmem:[%s563_s4] ss:$0 sm:$0xff] }
  0x3a   :  { %v82_v34 = vmul.f32 %v80_v32, %v80_v32  ;;  %v81_v35 = vmul.f32 %v79_v33, %v79_v33 }
  0x3b   :  { %382 = vmatpush3.bf16.msra.mxu0 %v410_v15 }
  0x3c   :  { %383 = vmatprep.subr.bf16.mxu0 %v411_v17  ;;  %v89_v36 = vrot.slane %v82_v34, 4  ;;  %v83_v37 = vrot.slane %v81_v35, 4 }
  0x3e   :  { %v90_v38 = vadd.f32 %v89_v36, %v82_v34  ;;  %v84_v39 = vadd.f32 %v83_v37, %v81_v35 }
  0x3f   :  { %384 = vmatpush3.bf16.msra.mxu0 %v412_v21 }
  0x40   :  { %385 = vmatprep.subr.bf16.mxu0 %v413_v23  ;;  %v91_v40 = vrot.slane %v90_v38, 2  ;;  %v85_v41 = vrot.slane %v84_v39, 2 }
  0x42   :  { %v92_v42 = vadd.f32 %v91_v40, %v90_v38  ;;  %v86_v43 = vadd.f32 %v85_v41, %v84_v39 }
  0x43   :  { %386 = vmatpush3.bf16.msra.mxu0 %v414_v27 }
  0x44   :  { %v93_v44 = vrot.slane %v92_v42, 1  ;;  %v87_v45 = vrot.slane %v86_v43, 1 }
  0x46   :  { %v94_v46 = vadd.f32 %v93_v44, %v92_v42  ;;  %v88_v47 = vadd.f32 %v87_v45, %v86_v43 }
  0x48   :  { %v96_v48 = vmul.f32 0.125, %v94_v46  ;;  %v95_v49 = vmul.f32 0.125, %v88_v47 }
  0x4a   :  { %v98_v50 = vadd.f32 1e-05, %v96_v48  ;;  %v97_v52 = vadd.f32 1e-05, %v95_v49 }
  0x4c   :  { %415 = vrsqrt.f32 %v98_v50 }
  0x4d   :  { %417 = vrsqrt.f32 %v97_v52 }
  0x59   :  { %v416_v59 = vpop.eup %415 }
  0x5a   :  { %v418_v61 = vpop.eup %417  ;;  %v114_v62 = vmul.f32 %v416_v59, %v110_v57 }
  0x5b   :  { %v113_v63 = vmul.f32 %v418_v61, %v106_v58 }
  0x5c   :  { %v122_v0 = vrot.slane %v114_v62, %v105_v56 }
  0x5d   :  { %v118_v3 = vrot.slane %v113_v63, %v105_v56 }
  0x5e   :  { %v124_v4 = vmul.f32 %v122_v0, %v80_v32 }
  0x5f   :  { %v123_v5 = vmul.f32 %v118_v3, %v79_v33 }
  0x60   :  { %v138_v6 = vadd.f32 %v134_v1, %v124_v4 }
  0x61   :  { %v137_v7 = vadd.f32 %v130_v2, %v123_v5 }
  0x62   :  { %v370_v8 = vpack.c.bf16 %v138_v6, %v138_v6 }
  0x63   :  { %v369_v9 = vpack.c.bf16 %v137_v7, %v137_v7 }
  0x64   :  { %323 = vmatprep.mubr.bf16.mxu0 %v370_v8 }
  0x65   :  { %324 = vmatmul.mubr.bf16.vlgmr.msra.gmra.mxu0 %v369_v9 }
 0x125   :  { %v387_v10 = vpop.f32.mrf.mxu0 }
 0x127   :  { %v388_v12 = vpop.f32.mrf.mxu0 }
 0x128   :  { %v389_v13 = vadd.f32 %v388_v12, %v387_v10 }
 0x129   :  { %v390_v14 = vpop.f32.mrf.mxu0 }
 0x12a   :  { %v326_v15 = vadd.f32 %v389_v13, %v349_v11 }
 0x12b   :  { %v391_v16 = vpop.f32.mrf.mxu0 }
 0x12c   :  { %331 = vst [vmem:[#allocation9] sm:$0xff] %v326_v15 }
 0x12d   :  { %490 = shalt.err (!%p487_p5)
}
 0x12e   :  { %341 = dma.vmem_to_hbm [thread:$0]  %s339_s11, 128, %s564_s5, [#allocation5]  }
 0x12f   :  { %503 = dma.done.wait [#allocation5], 128  }
 0x130   :  { %504 = vsyncadd [#allocation5], 4294967168 }
 0x131   :  { %345 = vsyncpa [#allocation4], 1 }
 0x132   :  { %346 = vsyncpa [#allocation7], 1 }
 0x133   :  { %347 = vsyncpa [#allocation5], 1 }

</bundles_post_ra>
